<compile_context>
chip_gen: v6e
topology: v6e:2x2x1
jax: 0.10.0
libtpu: 0.0.40
codegen_flags: <defaults>
</compile_context>

<pallas_src>
import jax
import jax.numpy as jnp
from jax.experimental import pallas as pl
from jax.experimental.pallas import tpu as pltpu

_SUBLANES = 8
_MAX_TILE_B = 4096                    # keeps (tile_b, 1) out/spill buffers tiny
_MAX_BYTES_PER_BUF = 16 * 1024 * 1024  # ~16 MiB DMA steps hide per-step overhead


def _round_up(n, m):
    return ((n + m - 1) // m) * m


def _vmem_limit_bytes():
    """Explicit scoped-VMEM limit: ~3/4 of this chip's physical VMEM
    (v5e/v6e: 96 MiB of 128; v7x: 48 MiB of 64)."""
    try:
        physical = pltpu.get_tpu_info().vmem_capacity_bytes
    except Exception:
        physical = 64 * 1024 * 1024   # conservative fallback (v7x per-core VMEM)
    return int(min(physical * 3 // 4, 96 * 1024 * 1024))


def _choose_tile_b(batch, hidden, itemsize, vmem_limit):
    """Largest batch tile (multiple of 8, capped) whose double-buffered x
    window + resident weight + output buffers fit vmem_limit with headroom,
    while keeping >= 2 grid steps when batch allows (v7x megacore sharding)."""
    if batch <= _SUBLANES:
        return batch                              # full dim; no tiling needed
    # (H, 1) weight pads to full 128-lane tiles in VMEM.
    w_vmem = _round_up(hidden, _SUBLANES) * 128 * 4
    reserve = w_vmem + 8 * 1024 * 1024            # out buffers + spill + slack
    per_buf = max(1 << 20, min(_MAX_BYTES_PER_BUF, (vmem_limit - reserve) // 2))
    tile = per_buf // max(1, hidden * itemsize)
    tile = max(_SUBLANES, (tile // _SUBLANES) * _SUBLANES)
    tile = min(tile, _MAX_TILE_B)
    # Ensure at least 2 grid steps so "parallel" has work to shard across TCs.
    tile = min(tile, max(_SUBLANES, _round_up(pl.cdiv(batch, 2), _SUBLANES)))
    return tile


def _value_head_kernel(x_ref, w_ref, b_ref, o_ref):
    # x_ref: (tile_b, H) VMEM activations (kept in HBM dtype; bf16 stays bf16).
    # w_ref: (H, 1)      VMEM weight column, resident across grid steps.
    # b_ref: (1,)        SMEM scalar bias (f32).
    # o_ref: (tile_b, 1) VMEM output block.
    y = jnp.dot(x_ref[...], w_ref[...], preferred_element_type=jnp.float32)
    o_ref[...] = (y + b_ref[0]).astype(o_ref.dtype)


def value_head_forward(x, weight, bias, *, tile_b=None):
    """Equivalent of ValueHead.forward: (x @ weight.T + bias)[:, 0].

    x:      (B, H)  activations (f32 or bf16 — kept in HBM dtype)
    weight: (1, H)  nn.Linear(input_size, 1).weight
    bias:   (1,)    nn.Linear(input_size, 1).bias
    returns (B,)    x.dtype
    """
    B, H = x.shape
    weight = weight.reshape(1, H)
    # Pre-transposed (H, 1) rhs = canonical MXU layout; cast to x.dtype so the
    # x tile is not promoted on the VPU inside the kernel (weight is tiny).
    w_col = weight.T.astype(x.dtype)
    bias1 = bias.reshape((1,)).astype(jnp.float32)

    vmem_limit = _vmem_limit_bytes()
    if tile_b is None:
        tile_b = _choose_tile_b(B, H, x.dtype.itemsize, vmem_limit)
    grid = (pl.cdiv(B, tile_b),)

    out = pl.pallas_call(
        _value_head_kernel,
        out_shape=jax.ShapeDtypeStruct((B, 1), x.dtype),
        grid_spec=pltpu.PrefetchScalarGridSpec(
            num_scalar_prefetch=0,
            grid=grid,
            in_specs=[
                # Batch-tiled activations: double-buffered HBM->VMEM pipeline;
                # the tail block may be partial (OOB rows never written back).
                pl.BlockSpec((tile_b, H), lambda i: (i, 0)),
                # Weight column: constant block index -> fetched once, resident.
                pl.BlockSpec((H, 1), lambda i: (0, 0)),
                # Scalar bias lives in SMEM (no padded VMEM tile / extra DMA).
                pl.BlockSpec(memory_space=pltpu.MemorySpace.SMEM),
            ],
            out_specs=pl.BlockSpec((tile_b, 1), lambda i: (i, 0)),
        ),
        compiler_params=pltpu.CompilerParams(
            # Batch rows independent -> shardable across TensorCores (v7x).
            dimension_semantics=("parallel",),
            vmem_limit_bytes=vmem_limit,
        ),
    )(x, w_col, bias1)

    # forward returns self.fc(x)[:, 0] -> shape (B,)
    return out[:, 0]


def init_value_head_params(key, input_size):
    """Deterministic synthetic init mimicking orthogonal_ on a (1, H) weight
    (a 1xH orthogonal matrix is a unit-norm row) and constant_(0) on bias."""
    w = jax.random.normal(key, (1, input_size), dtype=jnp.float32)
    w = w / jnp.linalg.norm(w)
    b = jnp.zeros((1,), dtype=jnp.float32)
    return w, b


if __name__ == "__main__":
    key = jax.random.PRNGKey(0)
    keys = jax.random.split(key, 8)
    # MXU default precision for f32 operands may use reduced-precision passes,
    # so the smoke-test tolerance is 2e-2 on O(1) outputs.
    TOL = dict(atol=2e-2, rtol=2e-2)

    # Config 1: H multiple of 128 -> clean MXU contraction path.
    b1, h1 = 4, 256
    x1 = jax.random.normal(keys[0], (b1, h1), dtype=jnp.float32)
    w1, bias1 = init_value_head_params(keys[1], h1)
    bias1 = bias1 + 0.25
    y1 = jax.block_until_ready(value_head_forward(x1, w1, bias1))
    ref1 = (x1 @ w1.T + bias1)[:, 0]
    assert y1.shape == (b1,)
    assert jnp.allclose(y1, ref1, **TOL)

    # Config 2: tiny hidden size not a multiple of 128 (full-dim blocks).
    b2, h2 = 2, 32
    x2 = jax.random.normal(keys[2], (b2, h2), dtype=jnp.float32)
    w2, bias2 = init_value_head_params(keys[3], h2)
    bias2 = bias2 - 0.5
    y2 = jax.block_until_ready(value_head_forward(x2, w2, bias2))
    ref2 = (x2 @ w2.T + bias2)[:, 0]
    assert y2.shape == (b2,)
    assert jnp.allclose(y2, ref2, **TOL)

    # Config 3: B not a multiple of the chosen batch tile -> partial tail block
    # (no wrapper pad) and a multi-step "parallel" grid.
    b3, h3 = 20, 128
    x3 = jax.random.normal(keys[4], (b3, h3), dtype=jnp.float32)
    w3, bias3 = init_value_head_params(keys[5], h3)
    bias3 = bias3 + 0.125
    y3 = jax.block_until_ready(value_head_forward(x3, w3, bias3))
    ref3 = (x3 @ w3.T + bias3)[:, 0]
    assert y3.shape == (b3,)
    assert jnp.allclose(y3, ref3, **TOL)

    # Config 4: bf16 activations stay bf16 in HBM (half the DMA traffic).
    b4, h4 = 16, 256
    x4 = jax.random.normal(keys[6], (b4, h4), dtype=jnp.float32).astype(jnp.bfloat16)
    w4, bias4 = init_value_head_params(keys[7], h4)
    y4 = jax.block_until_ready(value_head_forward(x4, w4, bias4))
    w4_bf = w4.astype(jnp.bfloat16).astype(jnp.float32)
    ref4 = (x4.astype(jnp.float32) @ w4_bf.T + bias4)[:, 0]
    assert y4.shape == (b4,) and y4.dtype == jnp.bfloat16
    assert jnp.allclose(y4.astype(jnp.float32), ref4, atol=5e-2, rtol=5e-2)

    print("KERNEL_OK")
</pallas_src>

<mosaic_0001>
module attributes {stable_mosaic.version = 11 : i64} {
  func.func @_value_head_kernel(%arg0: i32, %arg1: memref<4x256xf32, #tpu.memory_space<vmem>>, %arg2: memref<256x1xf32, #tpu.memory_space<vmem>>, %arg3: memref<1xf32, #tpu.memory_space<smem>>, %arg4: memref<4x1xf32, #tpu.memory_space<vmem>>) attributes {dimension_semantics = [#tpu.dimension_semantics<parallel>], iteration_bounds = array<i64: 1>, scalar_prefetch = 0 : i64, scratch_operands = 0 : i64, tpu.core_type = #tpu.core_type<tc>, window_params = [{transform_indices = @transform_0, window_bounds = array<i64: 4, 256>}, {pipeline_mode = #tpu.pipeline_mode<synchronous>, transform_indices = @transform_1, window_bounds = array<i64: 256, 1>}, {transform_indices = @transform_2, window_bounds = array<i64: 1>}, {transform_indices = @transform_3, window_bounds = array<i64: 4, 1>}]} {
    %c0 = arith.constant 0 : index
    %c0_0 = arith.constant 0 : index
    %0 = vector.load %arg1[%c0, %c0_0] : memref<4x256xf32, #tpu.memory_space<vmem>>, vector<4x256xf32>
    %c0_1 = arith.constant 0 : index
    %c0_2 = arith.constant 0 : index
    %1 = vector.load %arg2[%c0_1, %c0_2] : memref<256x1xf32, #tpu.memory_space<vmem>>, vector<256x1xf32>
    %cst = arith.constant dense<0.000000e+00> : vector<4x1xf32>
    %2 = tpu.matmul %0, %1, %cst {dimension_numbers = #tpu.dot_dimension_numbers<[1], [0], [0], [1], [0, 0, 1, 1], [], []>} : vector<4x256xf32>, vector<256x1xf32>, vector<4x1xf32> -> vector<4x1xf32>
    %c0_3 = arith.constant 0 : index
    %3 = memref.load %arg3[%c0_3] : memref<1xf32, #tpu.memory_space<smem>>
    %4 = vector.broadcast %3 : f32 to vector<4x1xf32>
    %5 = arith.addf %2, %4 : vector<4x1xf32>
    %c0_4 = arith.constant 0 : index
    %c0_5 = arith.constant 0 : index
    %6 = vector.load %arg4[%c0_4, %c0_5] : memref<4x1xf32, #tpu.memory_space<vmem>>, vector<4x1xf32>
    tpu.vector_store %arg4[%c0_4, %c0_5], %5 {strides = array<i32>} : memref<4x1xf32, #tpu.memory_space<vmem>>, vector<4x1xf32>,
    return
  }
  func.func @transform_0(%arg0: i32) -> (i32, i32) {
    %c0_i32 = arith.constant 0 : i32
    %c0_i32_0 = arith.constant 0 : i32
    return %arg0, %c0_i32 : i32, i32
  }
  func.func @transform_1(%arg0: i32) -> (i32, i32) {
    %c0_i32 = arith.constant 0 : i32
    %c0_i32_0 = arith.constant 0 : i32
    %c0_i32_1 = arith.constant 0 : i32
    return %c0_i32, %c0_i32_0 : i32, i32
  }
  func.func @transform_2(%arg0: i32) -> i32 {
    %c0_i32 = arith.constant 0 : i32
    %c0_i32_0 = arith.constant 0 : i32
    return %c0_i32 : i32
  }
  func.func @transform_3(%arg0: i32) -> (i32, i32) {
    %c0_i32 = arith.constant 0 : i32
    %c0_i32_0 = arith.constant 0 : i32
    return %arg0, %c0_i32 : i32, i32
  }
}

</mosaic_0001>

<bundles_post_ra>
// kernel: tpu_custom_call.1
= control target key start
LH: loop header
LB: loop body
LE: loop exit
PB: predicated region body
PF: predicated region fallthrough
CT: control target
= control target key end

     0   :  { %vm123_vm0 = vcmask 3072   ;;  %s290_s1 = inlined_call_operand.vmem [shape: f32[256,1], index: 1, kind: input, shape index: {}]   ;;  %s291_s0 = inlined_call_operand.vmem [shape: f32[4,256], index: 0, kind: input, shape index: {}]   ;;  %s292_s2 = inlined_call_operand.<no memory space> [shape: f32[1], index: 2, kind: input, shape index: {}]   ;;  %s293_s3 = inlined_call_operand.vmem [shape: f32[4,1], index: 3, kind: output, shape index: {}]  }
   0x1   :  { %v47_v0 = vld [vmem:[%s290_s1 + $0xf8] sm:$0xff]  ;;  %v46_v2 = vld [vmem:[%s290_s1 + $0xf0] sm:$0xff]  ;;  %v45_v4 = vld [vmem:[%s290_s1 + $0xe8] sm:$0xff]  ;;  %v49_v35 = vstv %s292_s2 }
   0x2   :  { %v31_v1 = vld [vmem:[%s290_s1 + $0x78] sm:$0xff]  ;;  %129 = vmatprep.subr.mxu0 %v47_v0  ;;  %v30_v3 = vld [vmem:[%s290_s1 + $0x70] sm:$0xff]  ;;  %v29_v5 = vld [vmem:[%s290_s1 + $0x68] sm:$0xff] }
   0x3   :  { %130 = vmatpush3.msra.mxu0 %v31_v1  ;;  %v44_v6 = vld [vmem:[%s290_s1 + $0xe0] sm:$0xff]  ;;  %v43_v8 = vld [vmem:[%s290_s1 + $0xd8] sm:$0xff]  ;;  %v42_v10 = vld [vmem:[%s290_s1 + $0xd0] sm:$0xff] }
   0x4   :  { %131 = vmatprep.subr.mxu0 %v46_v2  ;;  %v28_v7 = vld [vmem:[%s290_s1 + $0x60] sm:$0xff]  ;;  %v27_v9 = vld [vmem:[%s290_s1 + $0x58] sm:$0xff]  ;;  %v26_v11 = vld [vmem:[%s290_s1 + $0x50] sm:$0xff] }
   0x5   :  { %132 = vmatpush3.msra.mxu0 %v30_v3  ;;  %v41_v12 = vld [vmem:[%s290_s1 + $0xc8] sm:$0xff]  ;;  %v15_v13 = vld [vmem:[%s291_s0] sm:$0xff]  ;;  %v39_v18 = vld [vmem:[%s290_s1 + $0xb8] sm:$0xff] }
   0x6   :  { %133 = vmatprep.subr.mxu0 %v45_v4  ;;  %v25_v14 = vld [vmem:[%s290_s1 + $0x48] sm:$0xff]  ;;  %v51_v15 = vcombine.high %v15_v13, %v15_v13  ;;  %v40_v16 = vld [vmem:[%s290_s1 + $0xc0] sm:$0xff]  ;;  %v23_v19 = vld [vmem:[%s290_s1 + $0x38] sm:$0xff] }
   0x7   :  { %134 = vmatpush3.msra.mxu0 %v29_v5  ;;  %v24_v17 = vld [vmem:[%s290_s1 + $0x40] sm:$0xff]  ;;  %v38_v20 = vld [vmem:[%s290_s1 + $0xb0] sm:$0xff]  ;;  %v37_v22 = vld [vmem:[%s290_s1 + $0xa8] sm:$0xff] }
   0x8   :  { %135 = vmatprep.subr.mxu0 %v44_v6  ;;  %117 = vmatprep.mubr.f32.mxu0 %v51_v15  ;;  %v22_v21 = vld [vmem:[%s290_s1 + $0x30] sm:$0xff]  ;;  %v21_v23 = vld [vmem:[%s290_s1 + $0x28] sm:$0xff]  ;;  %v36_v24 = vld [vmem:[%s290_s1 + $0xa0] sm:$0xff] }
   0x9   :  { %136 = vmatpush3.msra.mxu0 %v28_v7  ;;  %v20_v25 = vld [vmem:[%s290_s1 + $0x20] sm:$0xff]  ;;  %v35_v26 = vld [vmem:[%s290_s1 + $0x98] sm:$0xff]  ;;  %v34_v28 = vld [vmem:[%s290_s1 + $0x90] sm:$0xff] }
   0xa   :  { %137 = vmatprep.subr.mxu0 %v43_v8  ;;  %v19_v27 = vld [vmem:[%s290_s1 + $0x18] sm:$0xff]  ;;  %v18_v29 = vld [vmem:[%s290_s1 + $0x10] sm:$0xff]  ;;  %v33_v30 = vld [vmem:[%s290_s1 + $0x88] sm:$0xff] }
   0xb   :  { %138 = vmatpush3.msra.mxu0 %v27_v9  ;;  %v17_v31 = vld [vmem:[%s290_s1 + $0x8] sm:$0xff]  ;;  %v32_v32 = vld [vmem:[%s290_s1 + $0x80] sm:$0xff] }
   0xc   :  { %139 = vmatprep.subr.mxu0 %v42_v10  ;;  %v16_v33 = vld [vmem:[%s290_s1] sm:$0xff] }
   0xd   :  { %140 = vmatpush3.msra.mxu0 %v26_v11 }
   0xe   :  { %141 = vmatprep.subr.mxu0 %v41_v12 }
   0xf   :  { %142 = vmatpush3.msra.mxu0 %v25_v14 }
  0x10   :  { %143 = vmatprep.subr.mxu0 %v40_v16 }
  0x11   :  { %144 = vmatpush3.msra.mxu0 %v24_v17 }
  0x12   :  { %145 = vmatprep.subr.mxu0 %v39_v18 }
  0x13   :  { %146 = vmatpush3.msra.mxu0 %v23_v19 }
  0x14   :  { %147 = vmatprep.subr.mxu0 %v38_v20 }
  0x15   :  { %148 = vmatpush3.msra.mxu0 %v22_v21 }
  0x16   :  { %149 = vmatprep.subr.mxu0 %v37_v22 }
  0x17   :  { %150 = vmatpush3.msra.mxu0 %v21_v23 }
  0x18   :  { %151 = vmatprep.subr.mxu0 %v36_v24 }
  0x19   :  { %152 = vmatpush3.msra.mxu0 %v20_v25 }
  0x1a   :  { %153 = vmatprep.subr.mxu0 %v35_v26 }
  0x1b   :  { %154 = vmatpush3.msra.mxu0 %v19_v27 }
  0x1c   :  { %155 = vmatprep.subr.mxu0 %v34_v28 }
  0x1d   :  { %156 = vmatpush3.msra.mxu0 %v18_v29 }
  0x1e   :  { %157 = vmatprep.subr.mxu0 %v33_v30 }
  0x1f   :  { %158 = vmatpush3.msra.mxu0 %v17_v31 }
  0x20   :  { %159 = vmatprep.subr.mxu0 %v32_v32 }
  0x21   :  { %160 = vmatpush3.msra.mxu0 %v16_v33 }
  0x22   :  { %118 = vmatmul.mubr.f32.vlgmr.msra.gmra.mxu0 %v15_v13 }
  0xe2   :  { %v161_v34 = vpop.f32.mrf.mxu0 }
  0xe4   :  { %v162_v36 = vpop.f32.mrf.mxu0 }
  0xe5   :  { %v163_v37 = vadd.f32 %v162_v36, %v161_v34 }
  0xe7   :  { %v120_v38 = vadd.f32 %v163_v37, %v49_v35 }
  0xe9   :  { %124 = vst.msk [vmem:[%s293_s3] sm:$0xf] %vm123_vm0, %v120_v38 }

</bundles_post_ra>
